<compile_context>
chip_gen: v7x
topology: tpu7x:2x2x1
jax: 0.10.0
libtpu: 0.0.40
codegen_flags: <defaults>
</compile_context>

<pallas_src>
import functools

import jax
import jax.numpy as jnp
from jax.experimental import pallas as pl
from jax.experimental.pallas import tpu as pltpu

_LANES = 128


def _cdiv(a, b):
    return (a + b - 1) // b


def _round_up(a, b):
    return _cdiv(a, b) * b


def _tpu_tuning():
    """(target_block_bytes, vmem_limit_bytes, multi_core) for this chip."""
    kind = ""
    try:
        dev = jax.devices()[0]
        if dev.platform == "tpu":
            kind = dev.device_kind.lower()
    except Exception:
        pass
    is_v7 = ("v7" in kind) or ("tpu7" in kind.replace(" ", ""))
    if is_v7:
        # 64 MiB physical VMEM, ~3.2 TB/s HBM, 2 TensorCores per chip.
        return 6 * 1024 * 1024, 48 * 1024 * 1024, True
    # v5e / v6e (128 MiB VMEM parts): bigger blocks are free; explicit limit is
    # mandatory on v5e where the default scoped VMEM is only 16 MiB.
    return 8 * 1024 * 1024, 64 * 1024 * 1024, False


def _dice_partial_kernel(x_ref, t_ref, inter_ref, denom_ref, *,
                         rows_tile, tiles_per_par, valid_rows, needs_row_mask):
    j = pl.program_id(2)

    # Output blocks are resident across the (innermost) reduction axis: zero
    # them at the start of each sweep and accumulate directly into them.
    @pl.when(j == 0)
    def _init():
        inter_ref[...] = jnp.zeros_like(inter_ref)
        denom_ref[...] = jnp.zeros_like(denom_ref)

    x = x_ref[...].astype(jnp.float32)  # (n_tile, rows_tile, 128)
    t = t_ref[...].astype(jnp.float32)

    if needs_row_mask:
        # Boundary blocks are padded with undefined data by Pallas; zero any
        # row past the real per-sample row count before accumulating.  The
        # tile id is the *unclamped* one so fully-redundant tiles contribute
        # nothing even though their index_map was clamped to a valid block.
        gid = pl.program_id(0) * tiles_per_par + j
        row_id = gid * rows_tile + jax.lax.broadcasted_iota(jnp.int32, x.shape, 1)
        valid = row_id < valid_rows
        x = jnp.where(valid, x, 0.0)
        t = jnp.where(valid, t, 0.0)

    # Lane-partial sums: reduce only the row (sublane) axis here; the final
    # 128-lane reduction happens once, outside the kernel, on a tiny array.
    inter_ref[...] += jnp.sum(x * t, axis=1)  # (n_tile, 128)
    denom_ref[...] += jnp.sum(x + t, axis=1)  # (n_tile, 128) fused denominator


def binary_dice_loss(inputs, targets):
    """Pallas implementation of BinaryDiceLoss.forward (N-leading inputs)."""
    n = targets.shape[0]
    x2d = inputs.reshape(n, -1)   # == torch .view(N, -1); free for contiguous arrays
    t2d = targets.reshape(n, -1)
    d = x2d.shape[1]

    target_block_bytes, vmem_limit_bytes, multi_core = _tpu_tuning()

    itemsize = max(jnp.dtype(x2d.dtype).itemsize, jnp.dtype(t2d.dtype).itemsize)
    sub = max(8, 32 // itemsize)  # sublane granularity: 8 f32 / 16 bf16 / 32 int8

    # ---- lane alignment -----------------------------------------------------
    # Common case D % 128 == 0: no padding at all (zero extra HBM traffic).
    # Otherwise pad only to the next 128-lane boundary (< 128 zeros/sample);
    # zeros change neither sum(x*t) nor sum(x)+sum(t).
    lane_pad = (-d) % _LANES
    if lane_pad:
        # TODO(synk): a fully copy-free path for D % 128 != 0 would need manual
        # tail DMAs (the per-sample data is not lane-aligned in HBM).
        x2d = jnp.pad(x2d, ((0, 0), (0, lane_pad)))
        t2d = jnp.pad(t2d, ((0, 0), (0, lane_pad)))
    r = (d + lane_pad) // _LANES      # exact 128-lane rows per sample
    x3d = x2d.reshape(n, r, _LANES)
    t3d = t2d.reshape(n, r, _LANES)

    # ---- tiling -------------------------------------------------------------
    # Batch tiling keeps VMEM blocks bounded for any batch size.
    max_n_tile = max(8, (target_block_bytes // (sub * _LANES * itemsize)) // 8 * 8)
    n_tile = min(n, max_n_tile)
    n_tiles = _cdiv(n, n_tile)

    # Row-tile size: close to the per-chip byte target, but keep at least ~4
    # reduction steps per core so the DMA pipeline overlaps with compute even
    # for medium-sized inputs.
    budget_rows = max(
        sub, (target_block_bytes // (n_tile * _LANES * itemsize)) // sub * sub)
    num_par_hint = 2 if multi_core else 1
    min_steps = 4
    rows_for_steps = max(
        sub, _round_up(_cdiv(_round_up(r, sub), num_par_hint * min_steps), sub))
    rows_tile = max(sub, min(budget_rows, rows_for_steps))

    row_blocks = _cdiv(r, rows_tile)
    # Two "core parallel" chunks only on multi-TensorCore chips (v7x); on
    # single-core generations the extra chunk would only add overhead.
    num_par = 2 if (multi_core and row_blocks >= 2) else 1
    tiles_per_par = _cdiv(row_blocks, num_par)
    covered_rows = num_par * tiles_per_par * rows_tile
    needs_row_mask = covered_rows != r
    last_row_block = row_blocks - 1

    def in_map(p, nb, j):
        # Clamp so no block starts fully outside the array; the in-kernel row
        # mask (driven by the unclamped tile id) zeroes redundant tiles.
        rb = jnp.minimum(p * tiles_per_par + j, last_row_block)
        return (nb, rb, 0)

    def out_map(p, nb, j):
        return (p, nb, 0)

    in_block = (n_tile, rows_tile, _LANES)
    out_block = (None, n_tile, _LANES)  # leading per-core dim squeezed

    kernel = functools.partial(
        _dice_partial_kernel,
        rows_tile=rows_tile,
        tiles_per_par=tiles_per_par,
        valid_rows=r,
        needs_row_mask=needs_row_mask,
    )

    in_bytes = jnp.dtype(x2d.dtype).itemsize + jnp.dtype(t2d.dtype).itemsize

    inter_out, denom_out = pl.pallas_call(
        kernel,
        out_shape=(
            jax.ShapeDtypeStruct((num_par, n, _LANES), jnp.float32),
            jax.ShapeDtypeStruct((num_par, n, _LANES), jnp.float32),
        ),
        grid_spec=pltpu.PrefetchScalarGridSpec(
            num_scalar_prefetch=0,
            grid=(num_par, n_tiles, tiles_per_par),
            in_specs=[
                pl.BlockSpec(in_block, in_map),
                pl.BlockSpec(in_block, in_map),
            ],
            out_specs=(
                pl.BlockSpec(out_block, out_map),
                pl.BlockSpec(out_block, out_map),
            ),
        ),
        compiler_params=pltpu.CompilerParams(
            dimension_semantics=(
                pltpu.CORE_PARALLEL if num_par > 1 else pltpu.ARBITRARY,
                pltpu.ARBITRARY,
                pltpu.ARBITRARY,
            ),
            vmem_limit_bytes=vmem_limit_bytes,
        ),
        cost_estimate=pl.CostEstimate(
            flops=4 * n * r * _LANES,
            transcendentals=0,
            bytes_accessed=in_bytes * n * r * _LANES + 2 * num_par * n * _LANES * 4,
        ),
    )(x3d, t3d)

    # Tiny epilogue: combine per-core chunks + the 128 lane partials per sample.
    inter = jnp.sum(inter_out, axis=(0, 2))  # (N,)  == sum(x*t)
    denom = jnp.sum(denom_out, axis=(0, 2))  # (N,)  == sum(x)+sum(t)
    smooth = jnp.float32(1.0)
    dice = (2.0 * inter + smooth) / (denom + smooth)
    return 1.0 - jnp.mean(dice)


def binary_dice_loss_ref(inputs, targets):
    n = targets.shape[0]
    xf = inputs.reshape(n, -1).astype(jnp.float32)
    tf = targets.reshape(n, -1).astype(jnp.float32)
    smooth = 1.0
    inter = jnp.sum(xf * tf, axis=1)
    dice = (2.0 * inter + smooth) / (jnp.sum(xf, axis=1) + jnp.sum(tf, axis=1) + smooth)
    return 1.0 - jnp.mean(dice)


if __name__ == "__main__":
    key = jax.random.PRNGKey(0)

    # Primary small test: NCHW (2, 4, 16, 16) -> D = 1024 (aligned, zero-copy).
    k1, k2 = jax.random.split(key)
    x = jax.nn.sigmoid(jax.random.normal(k1, (2, 4, 16, 16), dtype=jnp.float32))
    t = (jax.random.uniform(k2, (2, 4, 16, 16)) > 0.5).astype(jnp.float32)
    loss = jax.block_until_ready(binary_dice_loss(x, t))
    ref = jax.block_until_ready(binary_dice_loss_ref(x, t))
    assert jnp.allclose(loss, ref, rtol=1e-5, atol=1e-5), (loss, ref)

    # Unaligned D (exercises the minimal lane pad + in-kernel row mask).
    k3, k4 = jax.random.split(k2)
    x2 = jax.nn.sigmoid(jax.random.normal(k3, (3, 3, 37, 53), dtype=jnp.float32))
    t2 = (jax.random.uniform(k4, (3, 3, 37, 53)) > 0.5).astype(jnp.float32)
    loss2 = jax.block_until_ready(binary_dice_loss(x2, t2))
    ref2 = jax.block_until_ready(binary_dice_loss_ref(x2, t2))
    assert jnp.allclose(loss2, ref2, rtol=1e-4, atol=1e-5), (loss2, ref2)

    # Larger D (multi-step accumulation into the resident output block).
    k5, k6 = jax.random.split(k4)
    x3 = jax.nn.sigmoid(jax.random.normal(k5, (2, 16, 256, 256), dtype=jnp.float32))
    t3 = (jax.random.uniform(k6, (2, 16, 256, 256)) > 0.5).astype(jnp.float32)
    loss3 = jax.block_until_ready(binary_dice_loss(x3, t3))
    ref3 = jax.block_until_ready(binary_dice_loss_ref(x3, t3))
    assert jnp.allclose(loss3, ref3, rtol=1e-4, atol=1e-5), (loss3, ref3)

    print("KERNEL_OK")
</pallas_src>

<mosaic_0001>
module attributes {stable_mosaic.version = 11 : i64} {
  func.func @_dice_partial_kernel(%arg0: i32, %arg1: i32, %arg2: i32, %arg3: memref<2x8x128xf32, #tpu.memory_space<vmem>>, %arg4: memref<2x8x128xf32, #tpu.memory_space<vmem>>, %arg5: memref<1x2x128xf32, #tpu.memory_space<vmem>>, %arg6: memref<1x2x128xf32, #tpu.memory_space<vmem>>) attributes {dimension_semantics = [#tpu.dimension_semantics<arbitrary>, #tpu.dimension_semantics<arbitrary>, #tpu.dimension_semantics<arbitrary>], iteration_bounds = array<i64: 1, 1, 1>, scalar_prefetch = 0 : i64, scratch_operands = 0 : i64, tpu.core_type = #tpu.core_type<tc>, window_params = [{transform_indices = @transform_0, window_bounds = array<i64: 2, 8, 128>}, {transform_indices = @transform_1, window_bounds = array<i64: 2, 8, 128>}, {transform_indices = @transform_2, window_bounds = array<i64: 1, 2, 128>}, {transform_indices = @transform_3, window_bounds = array<i64: 1, 2, 128>}]} {
    %c0_i32 = arith.constant 0 : i32
    %0 = arith.cmpi eq, %arg2, %c0_i32 : i32
    %1 = arith.extui %0 : i1 to i32
    %c0_i32_0 = arith.constant 0 : i32
    %2 = arith.cmpi ne, %1, %c0_i32_0 : i32
    scf.if %2 {
      %cst_19 = arith.constant 0.000000e+00 : f32
      %21 = vector.broadcast %cst_19 : f32 to vector<2x128xf32>
      %c0_20 = arith.constant 0 : index
      %c0_21 = arith.constant 0 : index
      %c0_22 = arith.constant 0 : index
      %22 = vector.load %arg5[%c0_20, %c0_21, %c0_22] : memref<1x2x128xf32, #tpu.memory_space<vmem>>, vector<1x2x128xf32>
      %23 = vector.shape_cast %22 : vector<1x2x128xf32> to vector<2x128xf32>
      %24 = vector.shape_cast %21 : vector<2x128xf32> to vector<1x2x128xf32>
      tpu.vector_store %arg5[%c0_20, %c0_21, %c0_22], %24 {strides = array<i32>} : memref<1x2x128xf32, #tpu.memory_space<vmem>>, vector<1x2x128xf32>,
      %cst_23 = arith.constant 0.000000e+00 : f32
      %25 = vector.broadcast %cst_23 : f32 to vector<2x128xf32>
      %c0_24 = arith.constant 0 : index
      %c0_25 = arith.constant 0 : index
      %c0_26 = arith.constant 0 : index
      %26 = vector.load %arg6[%c0_24, %c0_25, %c0_26] : memref<1x2x128xf32, #tpu.memory_space<vmem>>, vector<1x2x128xf32>
      %27 = vector.shape_cast %26 : vector<1x2x128xf32> to vector<2x128xf32>
      %28 = vector.shape_cast %25 : vector<2x128xf32> to vector<1x2x128xf32>
      tpu.vector_store %arg6[%c0_24, %c0_25, %c0_26], %28 {strides = array<i32>} : memref<1x2x128xf32, #tpu.memory_space<vmem>>, vector<1x2x128xf32>,
    } else {
    }
    %c0 = arith.constant 0 : index
    %c0_1 = arith.constant 0 : index
    %c0_2 = arith.constant 0 : index
    %3 = vector.load %arg3[%c0, %c0_1, %c0_2] : memref<2x8x128xf32, #tpu.memory_space<vmem>>, vector<2x8x128xf32>
    %c0_3 = arith.constant 0 : index
    %c0_4 = arith.constant 0 : index
    %c0_5 = arith.constant 0 : index
    %4 = vector.load %arg4[%c0_3, %c0_4, %c0_5] : memref<2x8x128xf32, #tpu.memory_space<vmem>>, vector<2x8x128xf32>
    %c0_6 = arith.constant 0 : index
    %c0_7 = arith.constant 0 : index
    %c0_8 = arith.constant 0 : index
    %5 = vector.load %arg5[%c0_6, %c0_7, %c0_8] : memref<1x2x128xf32, #tpu.memory_space<vmem>>, vector<1x2x128xf32>
    %6 = vector.shape_cast %5 : vector<1x2x128xf32> to vector<2x128xf32>
    %7 = arith.mulf %3, %4 : vector<2x8x128xf32>
    %cst = arith.constant dense<0.000000e+00> : vector<2x128xf32>
    %8 = vector.multi_reduction <add>, %7, %cst [1] : vector<2x8x128xf32> to vector<2x128xf32>
    %9 = arith.addf %6, %8 : vector<2x128xf32>
    %c0_9 = arith.constant 0 : index
    %c0_10 = arith.constant 0 : index
    %c0_11 = arith.constant 0 : index
    %10 = vector.load %arg5[%c0_9, %c0_10, %c0_11] : memref<1x2x128xf32, #tpu.memory_space<vmem>>, vector<1x2x128xf32>
    %11 = vector.shape_cast %10 : vector<1x2x128xf32> to vector<2x128xf32>
    %12 = vector.shape_cast %9 : vector<2x128xf32> to vector<1x2x128xf32>
    tpu.vector_store %arg5[%c0_9, %c0_10, %c0_11], %12 {strides = array<i32>} : memref<1x2x128xf32, #tpu.memory_space<vmem>>, vector<1x2x128xf32>,
    %c0_12 = arith.constant 0 : index
    %c0_13 = arith.constant 0 : index
    %c0_14 = arith.constant 0 : index
    %13 = vector.load %arg6[%c0_12, %c0_13, %c0_14] : memref<1x2x128xf32, #tpu.memory_space<vmem>>, vector<1x2x128xf32>
    %14 = vector.shape_cast %13 : vector<1x2x128xf32> to vector<2x128xf32>
    %15 = arith.addf %3, %4 : vector<2x8x128xf32>
    %cst_15 = arith.constant dense<0.000000e+00> : vector<2x128xf32>
    %16 = vector.multi_reduction <add>, %15, %cst_15 [1] : vector<2x8x128xf32> to vector<2x128xf32>
    %17 = arith.addf %14, %16 : vector<2x128xf32>
    %c0_16 = arith.constant 0 : index
    %c0_17 = arith.constant 0 : index
    %c0_18 = arith.constant 0 : index
    %18 = vector.load %arg6[%c0_16, %c0_17, %c0_18] : memref<1x2x128xf32, #tpu.memory_space<vmem>>, vector<1x2x128xf32>
    %19 = vector.shape_cast %18 : vector<1x2x128xf32> to vector<2x128xf32>
    %20 = vector.shape_cast %17 : vector<2x128xf32> to vector<1x2x128xf32>
    tpu.vector_store %arg6[%c0_16, %c0_17, %c0_18], %20 {strides = array<i32>} : memref<1x2x128xf32, #tpu.memory_space<vmem>>, vector<1x2x128xf32>,
    return
  }
  func.func @transform_0(%arg0: i32, %arg1: i32, %arg2: i32) -> (i32, i32, i32) {
    %c1_i32 = arith.constant 1 : i32
    %0 = arith.muli %arg0, %c1_i32 : i32
    %1 = arith.addi %0, %arg2 : i32
    %c0_i32 = arith.constant 0 : i32
    %2 = arith.minsi %1, %c0_i32 : i32
    %c0_i32_0 = arith.constant 0 : i32
    %c0_i32_1 = arith.constant 0 : i32
    return %arg1, %2, %c0_i32_0 : i32, i32, i32
  }
  func.func @transform_1(%arg0: i32, %arg1: i32, %arg2: i32) -> (i32, i32, i32) {
    %c1_i32 = arith.constant 1 : i32
    %0 = arith.muli %arg0, %c1_i32 : i32
    %1 = arith.addi %0, %arg2 : i32
    %c0_i32 = arith.constant 0 : i32
    %2 = arith.minsi %1, %c0_i32 : i32
    %c0_i32_0 = arith.constant 0 : i32
    %c0_i32_1 = arith.constant 0 : i32
    return %arg1, %2, %c0_i32_0 : i32, i32, i32
  }
  func.func @transform_2(%arg0: i32, %arg1: i32, %arg2: i32) -> (i32, i32, i32) {
    %c0_i32 = arith.constant 0 : i32
    %c0_i32_0 = arith.constant 0 : i32
    return %arg0, %arg1, %c0_i32 : i32, i32, i32
  }
  func.func @transform_3(%arg0: i32, %arg1: i32, %arg2: i32) -> (i32, i32, i32) {
    %c0_i32 = arith.constant 0 : i32
    %c0_i32_0 = arith.constant 0 : i32
    return %arg0, %arg1, %c0_i32 : i32, i32, i32
  }
}

</mosaic_0001>

<bundles_post_ra>
// kernel: tpu_custom_call.1
= control target key start
LH: loop header
LB: loop body
LE: loop exit
PB: predicated region body
PF: predicated region fallthrough
CT: control target
= control target key end

     0   :  { %9 = vsyncpa [#allocation3], 0  ;;  %s324_s0 = inlined_call_operand.hbm [shape: f32[2,8,128], index: 0, kind: input, shape index: {}]   ;;  %s325_s1 = inlined_call_operand.hbm [shape: f32[2,8,128], index: 1, kind: input, shape index: {}]   ;;  %s326_s2 = inlined_call_operand.hbm [shape: f32[1,2,128], index: 2, kind: output, shape index: {0}]   ;;  %s327_s3 = inlined_call_operand.hbm [shape: f32[1,2,128], index: 3, kind: output, shape index: {1}]  }
   0x1   :  { %10 = vsyncpa [#allocation6], 0 }
   0x2   :  { %11 = vsyncpa [#allocation4], 0 }
   0x3   :  { %12 = vsyncpa [#allocation9], 0  ;;  %s249_s12 = smov [#allocation2]   ;;  %s153_s16 = scalar_lea.hbm %s324_s0, 256 }
   0x4   :  { %s23_s13 = sshll.u32 %s249_s12, 4  ;;  %p154_p0 = scmp.ne.s32.totalorder %s324_s0, %s153_s16  ;;  %s24_s13 = int_to_ptr.vmem [resolvable:$true] %s23_s13 }
   0x5   :  { %p157_p1 = scmp.lt.u32.totalorder %s153_s16, %s324_s0 }
   0x7   :  { %p159_p2 = pnand %p157_p1, %p154_p0 }
   0x9   :  { %162 = shalt.err (!%p159_p2)
}
   0xa   :  { %s163_s21 = scalar_lea.vmem %s24_s13, 256  ;;  %p168_p4 = scmp.lt.s32.totalorder %s24_s13, %s24_s13 }
   0xb   :  { %p164_p3 = scmp.ne.s32.totalorder %s24_s13, %s163_s21  ;;  %p169_p5 = scmp.lt.s32.totalorder %s163_s21, %s163_s21 }
   0xd   :  { %p170_p6 = por %p169_p5, %p168_p4 }
   0xf   :  { %p171_p7 = pnand %p170_p6, %p164_p3 }
  0x11   :  { %174 = shalt.err (!%p171_p7)
}
  0x12   :  { %s250_s22 = smov 128   ;;  %s251_s23 = smov 8  }
  0x13   :  { %29 = dma.hbm_to_vmem [thread:$0]  %s324_s0, 256, %s24_s13, [#allocation3], %s250_s22, %s250_s22, %s251_s23  }
  0x14   :  { %s252_s26 = smov [#allocation5]   ;;  %s175_s30 = scalar_lea.hbm %s325_s1, 256 }
  0x15   :  { %s40_s27 = sshll.u32 %s252_s26, 4  ;;  %p176_p8 = scmp.ne.s32.totalorder %s325_s1, %s175_s30  ;;  %s41_s27 = int_to_ptr.vmem [resolvable:$true] %s40_s27 }
  0x16   :  { %p179_p9 = scmp.lt.u32.totalorder %s175_s30, %s325_s1 }
  0x18   :  { %p181_p10 = pnand %p179_p9, %p176_p8 }
  0x1a   :  { %184 = shalt.err (!%p181_p10)
}
  0x1b   :  { %s185_s8 = scalar_lea.vmem %s41_s27, 256  ;;  %p190_p12 = scmp.lt.s32.totalorder %s41_s27, %s41_s27 }
  0x1c   :  { %p186_p11 = scmp.ne.s32.totalorder %s41_s27, %s185_s8  ;;  %p191_p13 = scmp.lt.s32.totalorder %s185_s8, %s185_s8 }
  0x1e   :  { %p192_p0 = por %p191_p13, %p190_p12 }
  0x20   :  { %p193_p1 = pnand %p192_p0, %p186_p11 }
  0x22   :  { %196 = shalt.err (!%p193_p1)
}
  0x23   :  { %46 = dma.hbm_to_vmem [thread:$0]  %s325_s1, 256, %s41_s27, [#allocation6], %s250_s22, %s250_s22, %s251_s23  }
  0x24   :  { %241 = dma.done.wait [#allocation3], 256  }
  0x25   :  { %242 = vsyncadd [#allocation3], 4294967040 }
  0x26   :  { %243 = dma.done.wait [#allocation6], 256  }
  0x27   :  { %244 = vsyncadd [#allocation6], 4294967040  ;;  %v253_v0 = vmov 0.0   ;;  %v65_v1 = vld [vmem:[#allocation2] sm:$0xff]  ;;  %v66_v2 = vld [vmem:[#allocation2 + $0x8] sm:$0xff]  ;;  %vm86_vm0 = vcmask 1041409  }
  0x28   :  { %63 = vst [vmem:[#allocation7] sm:$0x3] %v253_v0  ;;  %64 = vst [vmem:[#allocation8] sm:$0x3] %v253_v0  ;;  %v67_v3 = vld [vmem:[#allocation5] sm:$0xff]  ;;  %v68_v4 = vld [vmem:[#allocation5 + $0x8] sm:$0xff] }
  0x29   :  { %v70_v5 = vmul.f32 %v67_v3, %v65_v1  ;;  %v92_v6 = vadd.f32 %v67_v3, %v65_v1  ;;  %v71_v7 = vmul.f32 %v68_v4, %v66_v2  ;;  %v93_v8 = vadd.f32 %v68_v4, %v66_v2  ;;  %s254_s1 = smov [#allocation7]   ;;  %s255_s11 = smov [#allocation8]  }
  0x2a   :  { %s118_s10 = sshll.u32 %s254_s1, 4  ;;  %s128_s12 = sshll.u32 %s255_s11, 4  ;;  %s119_s10 = int_to_ptr.vmem [resolvable:$true] %s118_s10  ;;  %s129_s12 = int_to_ptr.vmem [resolvable:$true] %s128_s12 }
  0x2b   :  { %v72_v9 = vrot.slane %v70_v5, 4  ;;  %v94_v10 = vrot.slane %v92_v6, 4  ;;  %v78_v11 = vrot.slane %v71_v7, 4  ;;  %v100_v12 = vrot.slane %v93_v8, 4  ;;  %s197_s13 = scalar_lea.vmem %s119_s10, 32  ;;  %p202_p3 = scmp.lt.s32.totalorder %s119_s10, %s119_s10 }
  0x2c   :  { %p198_p2 = scmp.ne.s32.totalorder %s119_s10, %s197_s13  ;;  %p203_p4 = scmp.lt.s32.totalorder %s197_s13, %s197_s13 }
  0x2d   :  { %v73_v13 = vadd.f32 %v72_v9, %v70_v5  ;;  %v95_v14 = vadd.f32 %v94_v10, %v92_v6  ;;  %v79_v15 = vadd.f32 %v78_v11, %v71_v7  ;;  %v101_v16 = vadd.f32 %v100_v12, %v93_v8 }
  0x2e   :  { %p204_p5 = por %p203_p4, %p202_p3 }
  0x2f   :  { %v74_v17 = vrot.slane %v73_v13, 2  ;;  %v96_v18 = vrot.slane %v95_v14, 2  ;;  %v80_v19 = vrot.slane %v79_v15, 2  ;;  %v102_v20 = vrot.slane %v101_v16, 2  ;;  %v69_v31 = vld [vmem:[#allocation7] sm:$0x3] }
  0x30   :  { %v91_v33 = vld [vmem:[#allocation8] sm:$0x3]  ;;  %p205_p6 = pnand %p204_p5, %p198_p2 }
  0x31   :  { %v75_v21 = vadd.f32 %v74_v17, %v73_v13  ;;  %v97_v22 = vadd.f32 %v96_v18, %v95_v14  ;;  %v81_v23 = vadd.f32 %v80_v19, %v79_v15  ;;  %v103_v24 = vadd.f32 %v102_v20, %v101_v16 }
  0x33   :  { %v76_v25 = vrot.slane %v75_v21, 1  ;;  %v98_v26 = vrot.slane %v97_v22, 1  ;;  %v82_v27 = vrot.slane %v81_v23, 1  ;;  %v104_v28 = vrot.slane %v103_v24, 1 }
  0x35   :  { %v77_v29 = vadd.f32 %v76_v25, %v75_v21  ;;  %v99_v30 = vadd.f32 %v98_v26, %v97_v22  ;;  %v83_v32 = vadd.f32 %v82_v27, %v81_v23  ;;  %v105_v34 = vadd.f32 %v104_v28, %v103_v24 }
  0x37   :  { %v87_v35 = vsel %vm86_vm0, %v83_v32, %v77_v29  ;;  %v108_v36 = vsel %vm86_vm0, %v105_v34, %v99_v30 }
  0x38   :  { %v89_v37 = vadd.f32 %v87_v35, %v69_v31  ;;  %v110_v38 = vadd.f32 %v108_v36, %v91_v33 }
  0x3a   :  { %90 = vst [vmem:[#allocation7] sm:$0x3] %v89_v37  ;;  %111 = vst [vmem:[#allocation8] sm:$0x3] %v110_v38 }
  0x3b   :  { %208 = shalt.err (!%p205_p6)
}
  0x3c   :  { %s209_s16 = scalar_lea.hbm %s326_s2, 32 }
  0x3d   :  { %p210_p7 = scmp.ne.s32.totalorder %s326_s2, %s209_s16  ;;  %p213_p8 = scmp.lt.u32.totalorder %s209_s16, %s326_s2 }
  0x3f   :  { %p215_p9 = pnand %p213_p8, %p210_p7 }
  0x41   :  { %218 = shalt.err (!%p215_p9)
}
  0x42   :  { %121 = dma.vmem_to_hbm [thread:$0]  %s119_s10, 32, %s326_s2, [#allocation4]  }
  0x43   :  { %s219_s23 = scalar_lea.vmem %s129_s12, 32  ;;  %p224_p11 = scmp.lt.s32.totalorder %s129_s12, %s129_s12 }
  0x44   :  { %p220_p10 = scmp.ne.s32.totalorder %s129_s12, %s219_s23  ;;  %p225_p12 = scmp.lt.s32.totalorder %s219_s23, %s219_s23 }
  0x46   :  { %p226_p13 = por %p225_p12, %p224_p11 }
  0x48   :  { %p227_p0 = pnand %p226_p13, %p220_p10 }
  0x4a   :  { %230 = shalt.err (!%p227_p0)
}
  0x4b   :  { %s231_s26 = scalar_lea.hbm %s327_s3, 32 }
  0x4c   :  { %p232_p1 = scmp.ne.s32.totalorder %s327_s3, %s231_s26  ;;  %p235_p2 = scmp.lt.u32.totalorder %s231_s26, %s327_s3 }
  0x4e   :  { %p237_p3 = pnand %p235_p2, %p232_p1 }
  0x50   :  { %240 = shalt.err (!%p237_p3)
}
  0x51   :  { %131 = dma.vmem_to_hbm [thread:$0]  %s129_s12, 32, %s327_s3, [#allocation9]  }
  0x52   :  { %245 = dma.done.wait [#allocation4], 32  }
  0x53   :  { %246 = vsyncadd [#allocation4], 4294967264 }
  0x54   :  { %247 = dma.done.wait [#allocation9], 32  }
  0x55   :  { %248 = vsyncadd [#allocation9], 4294967264 }
  0x56   :  { %138 = vsyncpa [#allocation3], 1 }
  0x57   :  { %139 = vsyncpa [#allocation6], 1 }
  0x58   :  { %140 = vsyncpa [#allocation4], 1 }
  0x59   :  { %141 = vsyncpa [#allocation9], 1 }

</bundles_post_ra>
